<compile_context>
chip_gen: v7x
topology: tpu7x:2x2x1
jax: 0.10.0
libtpu: 0.0.40
codegen_flags: <defaults>
</compile_context>

<pallas_src>
import functools

import jax
import jax.numpy as jnp
from jax.experimental import pallas as pl
from jax.experimental.pallas import tpu as pltpu


def _round_up(x, m):
    return ((x + m - 1) // m) * m


def _cdiv(a, b):
    return (a + b - 1) // b


def _sublane(dtype):
    # Minimum sublane tile per dtype packing: f32 -> 8, bf16 -> 16, int8/fp8 -> 32.
    return max(8, 32 // jnp.dtype(dtype).itemsize)


def _feature_align(dtype):
    # v6e/v7x MXU is 256x256 for sub-32-bit operands (128 only half-fills it);
    # 128 fully feeds the f32 path and v5e's 128x128 MXU.
    return 256 if jnp.dtype(dtype).itemsize < 4 else 128


def _vmem_limit_bytes():
    # Generation-aware scoped-VMEM limit (~0.8x physical): ~102 MiB on v5e/v6e,
    # ~51 MiB per TensorCore on v7x.  Conservative 64 MiB assumption if the
    # hardware query is unavailable.
    phys = 64 * 1024 * 1024
    try:
        phys = int(pltpu.get_tpu_info().vmem_capacity_bytes)
    except Exception:
        pass
    return int(phys * 4 // 5)


def ffn_kernel(x_ref, w_in_ref, b_in_ref, w_out_ref, b_out_ref, o_ref, acc_ref):
    # x_ref:     (tm, Hp)   native dtype (f32 or bf16), revisited across f
    # w_in_ref:  (Hp, tf)   pre-transposed W_in chunk
    # b_in_ref:  (1, tf)
    # w_out_ref: (tf, Hp)   pre-transposed W_out chunk
    # b_out_ref: (1, Hp)
    # acc_ref:   (tm, Hp)   f32 accumulator scratch, persistent across f
    f = pl.program_id(1)

    @pl.when(f == 0)
    def _():
        acc_ref[...] = jnp.zeros_like(acc_ref)

    # h_f = relu(x @ W_in^T[:, chunk] + b_in[chunk])   -> (tm, tf) in f32
    h = jnp.dot(x_ref[...], w_in_ref[...], preferred_element_type=jnp.float32)
    h = jnp.maximum(h + b_in_ref[...].astype(jnp.float32), 0.0)
    # acc += h_f @ W_out^T[chunk, :]                   -> (tm, Hp) in f32
    acc_ref[...] += jnp.dot(h.astype(w_out_ref.dtype), w_out_ref[...],
                            preferred_element_type=jnp.float32)

    @pl.when(f == pl.num_programs(1) - 1)
    def _():
        o_ref[...] = (acc_ref[...]
                      + b_out_ref[...].astype(jnp.float32)).astype(o_ref.dtype)


@functools.partial(jax.jit, static_argnames=("tm", "tf"))
def position_wise_ffn(h_V, W_in, b_in, W_out, b_out, *, tm=512, tf=512):
    """h_V: (..., num_hidden). W_in: (num_ff, num_hidden), W_out:
    (num_hidden, num_ff) -- PyTorch nn.Linear layout; biases 1-D."""
    orig_shape = h_V.shape
    H = orig_shape[-1]
    F = W_in.shape[0]

    x = h_V.reshape(-1, H)
    M = x.shape[0]

    align = _feature_align(W_in.dtype)
    sub = _sublane(h_V.dtype)

    # Lane-dense hidden dim.
    Hp = _round_up(H, align)

    # F is streamed over the inner grid axis in tf_eff-wide chunks; pad F so the
    # chunks tile it exactly (zero pad => relu(0+0)=0 and zero W_out rows, no-op).
    Fp0 = _round_up(F, align)
    nf = max(1, _cdiv(Fp0, tf))
    tf_eff = _round_up(_cdiv(Fp0, nf), align)
    Fp = nf * tf_eff

    # Balanced row tile, rounded to the dtype's sublane packing.  No M padding:
    # the ragged last block only produces out-of-range rows masked on store.
    nr = max(1, _cdiv(M, tm))
    if nr < 2 and M >= 2 * 256:
        nr = 2          # keep both v7x TensorCores busy / give the pipeline overlap
    tm_eff = _round_up(_cdiv(M, nr), sub)
    nr = _cdiv(M, tm_eff)

    # Feature-dim zero pads (no-ops when already aligned).
    if Hp != H:
        x = jnp.pad(x, ((0, 0), (0, Hp - H)))
    # One amortized XLA transpose per call instead of a per-step in-kernel relayout.
    w_in_t = W_in.T
    if (Hp, Fp) != (H, F):
        w_in_t = jnp.pad(w_in_t, ((0, Hp - H), (0, Fp - F)))
    w_out_t = W_out.T
    if (Fp, Hp) != (F, H):
        w_out_t = jnp.pad(w_out_t, ((0, Fp - F), (0, Hp - H)))
    b_in_row = jnp.pad(b_in, (0, Fp - F)).reshape(1, Fp)
    b_out_row = jnp.pad(b_out, (0, Hp - H)).reshape(1, Hp)

    act_bytes = jnp.dtype(h_V.dtype).itemsize
    w_bytes = jnp.dtype(W_in.dtype).itemsize
    cost = pl.CostEstimate(
        flops=4 * M * Hp * Fp,                              # two matmuls
        transcendentals=0,
        bytes_accessed=2 * M * Hp * act_bytes + 2 * nr * Fp * Hp * w_bytes,
    )

    out = pl.pallas_call(
        ffn_kernel,
        out_shape=jax.ShapeDtypeStruct((M, Hp), h_V.dtype),
        grid_spec=pltpu.PrefetchScalarGridSpec(
            num_scalar_prefetch=0,
            grid=(nr, nf),                                  # rows outer, F (reduction) inner
            in_specs=[
                pl.BlockSpec((tm_eff, Hp), lambda i, f: (i, 0)),   # x rows (revisited over f)
                pl.BlockSpec((Hp, tf_eff), lambda i, f: (0, f)),   # W_in^T chunk (streamed)
                pl.BlockSpec((1, tf_eff), lambda i, f: (0, f)),    # b_in chunk
                pl.BlockSpec((tf_eff, Hp), lambda i, f: (f, 0)),   # W_out^T chunk (streamed)
                pl.BlockSpec((1, Hp), lambda i, f: (0, 0)),        # b_out (constant, tiny)
            ],
            out_specs=pl.BlockSpec((tm_eff, Hp), lambda i, f: (i, 0)),
            scratch_shapes=[pltpu.VMEM((tm_eff, Hp), jnp.float32)],
        ),
        compiler_params=pltpu.CompilerParams(
            dimension_semantics=("parallel", "arbitrary"),
            vmem_limit_bytes=_vmem_limit_bytes(),
        ),
        cost_estimate=cost,
    )(x, w_in_t, b_in_row, w_out_t, b_out_row)

    if Hp != H:
        out = out[:, :H]
    return out.reshape(orig_shape)


def init_params(key, num_hidden, num_ff, dtype=jnp.float32):
    # Deterministic init mimicking nn.Linear defaults: U(-1/sqrt(fan_in), +1/sqrt(fan_in))
    k1, k2, k3, k4 = jax.random.split(key, 4)
    bound_in = 1.0 / (num_hidden ** 0.5)
    bound_out = 1.0 / (num_ff ** 0.5)
    W_in = jax.random.uniform(k1, (num_ff, num_hidden), dtype, -bound_in, bound_in)
    b_in = jax.random.uniform(k2, (num_ff,), dtype, -bound_in, bound_in)
    W_out = jax.random.uniform(k3, (num_hidden, num_ff), dtype, -bound_out, bound_out)
    b_out = jax.random.uniform(k4, (num_hidden,), dtype, -bound_out, bound_out)
    return W_in, b_in, W_out, b_out


if __name__ == "__main__":
    num_hidden, num_ff = 32, 64
    batch, seq = 2, 8

    key = jax.random.PRNGKey(0)
    k_x, k_p = jax.random.split(key)
    h_V = jax.random.normal(k_x, (batch, seq, num_hidden), jnp.float32)
    W_in, b_in, W_out, b_out = init_params(k_p, num_hidden, num_ff)

    # --- f32 path ---
    out = jax.block_until_ready(position_wise_ffn(h_V, W_in, b_in, W_out, b_out))
    ref = jnp.maximum(h_V @ W_in.T + b_in, 0.0) @ W_out.T + b_out
    assert out.shape == h_V.shape
    assert jnp.allclose(out, ref, atol=1e-5, rtol=1e-5), "f32 mismatch vs reference"

    # --- ragged row count (exercises the unpadded-M masked-store path) ---
    h_V2 = jax.random.normal(jax.random.PRNGKey(1), (3, 5, num_hidden), jnp.float32)
    out2 = jax.block_until_ready(position_wise_ffn(h_V2, W_in, b_in, W_out, b_out))
    ref2 = jnp.maximum(h_V2 @ W_in.T + b_in, 0.0) @ W_out.T + b_out
    assert jnp.allclose(out2, ref2, atol=1e-5, rtol=1e-5), "ragged-M mismatch"

    # --- bf16 path (native-dtype operands, f32 accumulation) ---
    h_Vb = h_V.astype(jnp.bfloat16)
    Wib, bib = W_in.astype(jnp.bfloat16), b_in.astype(jnp.bfloat16)
    Wob, bob = W_out.astype(jnp.bfloat16), b_out.astype(jnp.bfloat16)
    out_b = jax.block_until_ready(position_wise_ffn(h_Vb, Wib, bib, Wob, bob))
    h_ref = jnp.maximum(
        jnp.dot(h_Vb, Wib.T, preferred_element_type=jnp.float32)
        + bib.astype(jnp.float32), 0.0).astype(jnp.bfloat16)
    ref_b = (jnp.dot(h_ref, Wob.T, preferred_element_type=jnp.float32)
             + bob.astype(jnp.float32)).astype(jnp.bfloat16)
    assert out_b.dtype == jnp.bfloat16
    assert jnp.allclose(out_b.astype(jnp.float32), ref_b.astype(jnp.float32),
                        atol=3e-2, rtol=3e-2), "bf16 mismatch vs reference"

    print("KERNEL_OK")
</pallas_src>

<mosaic_0001>
module attributes {stable_mosaic.version = 11 : i64} {
  func.func @ffn_kernel(%arg0: i32, %arg1: i32, %arg2: memref<16x128xf32, #tpu.memory_space<vmem>>, %arg3: memref<128x128xf32, #tpu.memory_space<vmem>>, %arg4: memref<1x128xf32, #tpu.memory_space<vmem>>, %arg5: memref<128x128xf32, #tpu.memory_space<vmem>>, %arg6: memref<1x128xf32, #tpu.memory_space<vmem>>, %arg7: memref<16x128xf32, #tpu.memory_space<vmem>>, %arg8: memref<16x128xf32, #tpu.memory_space<vmem>>) attributes {dimension_semantics = [#tpu.dimension_semantics<parallel>, #tpu.dimension_semantics<arbitrary>], iteration_bounds = array<i64: 1, 1>, scalar_prefetch = 0 : i64, scratch_operands = 1 : i64, tpu.core_type = #tpu.core_type<tc>, window_params = [{transform_indices = @transform_0, window_bounds = array<i64: 16, 128>}, {transform_indices = @transform_1, window_bounds = array<i64: 128, 128>}, {transform_indices = @transform_2, window_bounds = array<i64: 1, 128>}, {transform_indices = @transform_3, window_bounds = array<i64: 128, 128>}, {pipeline_mode = #tpu.pipeline_mode<synchronous>, transform_indices = @transform_4, window_bounds = array<i64: 1, 128>}, {transform_indices = @transform_5, window_bounds = array<i64: 16, 128>}]} {
    %c0_i32 = arith.constant 0 : i32
    %0 = arith.cmpi eq, %arg1, %c0_i32 : i32
    %1 = arith.extui %0 : i1 to i32
    %c0_i32_0 = arith.constant 0 : i32
    %2 = arith.cmpi ne, %1, %c0_i32_0 : i32
    scf.if %2 {
      %cst_16 = arith.constant 0.000000e+00 : f32
      %19 = vector.broadcast %cst_16 : f32 to vector<16x128xf32>
      %c0_17 = arith.constant 0 : index
      %c0_18 = arith.constant 0 : index
      %20 = vector.load %arg8[%c0_17, %c0_18] : memref<16x128xf32, #tpu.memory_space<vmem>>, vector<16x128xf32>
      tpu.vector_store %arg8[%c0_17, %c0_18], %19 {strides = array<i32>} : memref<16x128xf32, #tpu.memory_space<vmem>>, vector<16x128xf32>,
    } else {
    }
    %c0 = arith.constant 0 : index
    %c0_1 = arith.constant 0 : index
    %3 = vector.load %arg2[%c0, %c0_1] : memref<16x128xf32, #tpu.memory_space<vmem>>, vector<16x128xf32>
    %c0_2 = arith.constant 0 : index
    %c0_3 = arith.constant 0 : index
    %4 = vector.load %arg3[%c0_2, %c0_3] : memref<128x128xf32, #tpu.memory_space<vmem>>, vector<128x128xf32>
    %cst = arith.constant dense<0.000000e+00> : vector<16x128xf32>
    %5 = tpu.matmul %3, %4, %cst {dimension_numbers = #tpu.dot_dimension_numbers<[1], [0], [0], [1], [0, 0, 1, 1], [], []>} : vector<16x128xf32>, vector<128x128xf32>, vector<16x128xf32> -> vector<16x128xf32>
    %c0_4 = arith.constant 0 : index
    %c0_5 = arith.constant 0 : index
    %6 = vector.load %arg4[%c0_4, %c0_5] : memref<1x128xf32, #tpu.memory_space<vmem>>, vector<1x128xf32>
    %7 = vector.broadcast %6 : vector<1x128xf32> to vector<16x128xf32>
    %8 = arith.addf %5, %7 : vector<16x128xf32>
    %cst_6 = arith.constant 0.000000e+00 : f32
    %9 = vector.broadcast %cst_6 : f32 to vector<16x128xf32>
    %10 = arith.maximumf %8, %9 : vector<16x128xf32>
    %c0_7 = arith.constant 0 : index
    %c0_8 = arith.constant 0 : index
    %11 = vector.load %arg8[%c0_7, %c0_8] : memref<16x128xf32, #tpu.memory_space<vmem>>, vector<16x128xf32>
    %c0_9 = arith.constant 0 : index
    %c0_10 = arith.constant 0 : index
    %12 = vector.load %arg5[%c0_9, %c0_10] : memref<128x128xf32, #tpu.memory_space<vmem>>, vector<128x128xf32>
    %cst_11 = arith.constant dense<0.000000e+00> : vector<16x128xf32>
    %13 = tpu.matmul %10, %12, %cst_11 {dimension_numbers = #tpu.dot_dimension_numbers<[1], [0], [0], [1], [0, 0, 1, 1], [], []>} : vector<16x128xf32>, vector<128x128xf32>, vector<16x128xf32> -> vector<16x128xf32>
    %14 = arith.addf %11, %13 : vector<16x128xf32>
    %c0_12 = arith.constant 0 : index
    %c0_13 = arith.constant 0 : index
    %15 = vector.load %arg8[%c0_12, %c0_13] : memref<16x128xf32, #tpu.memory_space<vmem>>, vector<16x128xf32>
    tpu.vector_store %arg8[%c0_12, %c0_13], %14 {strides = array<i32>} : memref<16x128xf32, #tpu.memory_space<vmem>>, vector<16x128xf32>,
    %c0_i32_14 = arith.constant 0 : i32
    %16 = arith.cmpi eq, %arg1, %c0_i32_14 : i32
    %17 = arith.extui %16 : i1 to i32
    %c0_i32_15 = arith.constant 0 : i32
    %18 = arith.cmpi ne, %17, %c0_i32_15 : i32
    scf.if %18 {
      %c0_16 = arith.constant 0 : index
      %c0_17 = arith.constant 0 : index
      %19 = vector.load %arg8[%c0_16, %c0_17] : memref<16x128xf32, #tpu.memory_space<vmem>>, vector<16x128xf32>
      %c0_18 = arith.constant 0 : index
      %c0_19 = arith.constant 0 : index
      %20 = vector.load %arg6[%c0_18, %c0_19] : memref<1x128xf32, #tpu.memory_space<vmem>>, vector<1x128xf32>
      %21 = vector.broadcast %20 : vector<1x128xf32> to vector<16x128xf32>
      %22 = arith.addf %19, %21 : vector<16x128xf32>
      %c0_20 = arith.constant 0 : index
      %c0_21 = arith.constant 0 : index
      %23 = vector.load %arg7[%c0_20, %c0_21] : memref<16x128xf32, #tpu.memory_space<vmem>>, vector<16x128xf32>
      tpu.vector_store %arg7[%c0_20, %c0_21], %22 {strides = array<i32>} : memref<16x128xf32, #tpu.memory_space<vmem>>, vector<16x128xf32>,
    } else {
    }
    return
  }
  func.func @transform_0(%arg0: i32, %arg1: i32) -> (i32, i32) {
    %c0_i32 = arith.constant 0 : i32
    %c0_i32_0 = arith.constant 0 : i32
    return %arg0, %c0_i32 : i32, i32
  }
  func.func @transform_1(%arg0: i32, %arg1: i32) -> (i32, i32) {
    %c0_i32 = arith.constant 0 : i32
    %c0_i32_0 = arith.constant 0 : i32
    return %c0_i32, %arg1 : i32, i32
  }
  func.func @transform_2(%arg0: i32, %arg1: i32) -> (i32, i32) {
    %c0_i32 = arith.constant 0 : i32
    %c0_i32_0 = arith.constant 0 : i32
    return %c0_i32, %arg1 : i32, i32
  }
  func.func @transform_3(%arg0: i32, %arg1: i32) -> (i32, i32) {
    %c0_i32 = arith.constant 0 : i32
    %c0_i32_0 = arith.constant 0 : i32
    return %arg1, %c0_i32 : i32, i32
  }
  func.func @transform_4(%arg0: i32, %arg1: i32) -> (i32, i32) {
    %c0_i32 = arith.constant 0 : i32
    %c0_i32_0 = arith.constant 0 : i32
    %c0_i32_1 = arith.constant 0 : i32
    return %c0_i32, %c0_i32_0 : i32, i32
  }
  func.func @transform_5(%arg0: i32, %arg1: i32) -> (i32, i32) {
    %c0_i32 = arith.constant 0 : i32
    %c0_i32_0 = arith.constant 0 : i32
    return %arg0, %c0_i32 : i32, i32
  }
}

</mosaic_0001>

<bundles_post_ra>
// kernel: position_wise_ffn.1
= control target key start
LH: loop header
LB: loop body
LE: loop exit
PB: predicated region body
PF: predicated region fallthrough
CT: control target
= control target key end

     0   :  { %s561_s1 = inlined_call_operand.vmem [shape: f32[128,128], index: 1, kind: input, shape index: {}]   ;;  %s562_s0 = inlined_call_operand.vmem [shape: f32[16,128], index: 0, kind: input, shape index: {}]   ;;  %s563_s3 = inlined_call_operand.vmem [shape: f32[128,128], index: 3, kind: input, shape index: {}]   ;;  %s564_s2 = inlined_call_operand.vmem [shape: f32[1,128], index: 2, kind: input, shape index: {}]   ;;  %s565_s4 = inlined_call_operand.vmem [shape: f32[1,128], index: 4, kind: input, shape index: {}]   ;;  %s566_s5 = inlined_call_operand.vmem [shape: f32[16,128], index: 5, kind: output, shape index: {}]  }
   0x1   :  { %v28_v0 = vld [vmem:[%s561_s1] sm:$0xff]  ;;  %v29_v1 = vld [vmem:[%s561_s1 + $0x8] sm:$0xff]  ;;  %v30_v2 = vld [vmem:[%s561_s1 + $0x10] sm:$0xff] }
   0x2   :  { %v353_v3 = vpack.c.bf16 %v29_v1, %v28_v0  ;;  %v31_v4 = vld [vmem:[%s561_s1 + $0x18] sm:$0xff]  ;;  %v32_v6 = vld [vmem:[%s561_s1 + $0x20] sm:$0xff]  ;;  %v33_v7 = vld [vmem:[%s561_s1 + $0x28] sm:$0xff] }
   0x3   :  { %v357_v5 = vpack.c.bf16 %v31_v4, %v30_v2  ;;  %v361_v8 = vpack.c.bf16 %v33_v7, %v32_v6  ;;  %v34_v9 = vld [vmem:[%s561_s1 + $0x30] sm:$0xff]  ;;  %v35_v10 = vld [vmem:[%s561_s1 + $0x38] sm:$0xff]  ;;  %v26_v11 = vld [vmem:[%s562_s0] sm:$0xff] }
   0x4   :  { %354 = vmatprep.subr.bf16.mxu0 %v353_v3  ;;  %315 = vmatprep.mubr.f32.mxu0 %v26_v11  ;;  %v130_v12 = vld [vmem:[%s563_s3] sm:$0xff]  ;;  %v131_v13 = vld [vmem:[%s563_s3 + $0x8] sm:$0xff]  ;;  %v132_v14 = vld [vmem:[%s563_s3 + $0x10] sm:$0xff]  ;;  %v365_v20 = vpack.c.bf16 %v35_v10, %v34_v9 }
   0x5   :  { %356 = vmatpush3.bf16.msra.mxu0 %v353_v3  ;;  %v385_v15 = vpack.c.bf16 %v131_v13, %v130_v12  ;;  %v133_v16 = vld [vmem:[%s563_s3 + $0x18] sm:$0xff]  ;;  %v134_v18 = vld [vmem:[%s563_s3 + $0x20] sm:$0xff]  ;;  %v135_v19 = vld [vmem:[%s563_s3 + $0x28] sm:$0xff] }
   0x6   :  { %358 = vmatprep.subr.bf16.mxu0 %v357_v5  ;;  %v389_v17 = vpack.c.bf16 %v133_v16, %v132_v14  ;;  %v36_v21 = vld [vmem:[%s561_s1 + $0x40] sm:$0xff]  ;;  %v37_v22 = vld [vmem:[%s561_s1 + $0x48] sm:$0xff]  ;;  %v393_v23 = vpack.c.bf16 %v135_v19, %v134_v18  ;;  %v136_v24 = vld [vmem:[%s563_s3 + $0x30] sm:$0xff] }
   0x7   :  { %386 = vmatprep.subr.bf16.mxu1 %v385_v15  ;;  %v137_v25 = vld [vmem:[%s563_s3 + $0x38] sm:$0xff]  ;;  %v369_v26 = vpack.c.bf16 %v37_v22, %v36_v21  ;;  %v38_v27 = vld [vmem:[%s561_s1 + $0x50] sm:$0xff]  ;;  %v138_v30 = vld [vmem:[%s563_s3 + $0x40] sm:$0xff] }
   0x8   :  { %388 = vmatpush3.bf16.msra.mxu1 %v385_v15  ;;  %v39_v28 = vld [vmem:[%s561_s1 + $0x58] sm:$0xff]  ;;  %v397_v29 = vpack.c.bf16 %v137_v25, %v136_v24  ;;  %v139_v31 = vld [vmem:[%s563_s3 + $0x48] sm:$0xff]  ;;  %v40_v33 = vld [vmem:[%s561_s1 + $0x60] sm:$0xff] }
   0x9   :  { %360 = vmatpush3.bf16.msra.mxu0 %v357_v5  ;;  %390 = vmatprep.subr.bf16.mxu1 %v389_v17  ;;  %v373_v32 = vpack.c.bf16 %v39_v28, %v38_v27  ;;  %v41_v34 = vld [vmem:[%s561_s1 + $0x68] sm:$0xff]  ;;  %v401_v35 = vpack.c.bf16 %v139_v31, %v138_v30  ;;  %v140_v36 = vld [vmem:[%s563_s3 + $0x50] sm:$0xff]  ;;  %v141_v37 = vld [vmem:[%s563_s3 + $0x58] sm:$0xff] }
   0xa   :  { %362 = vmatprep.subr.bf16.mxu0 %v361_v8  ;;  %v377_v38 = vpack.c.bf16 %v41_v34, %v40_v33  ;;  %v42_v39 = vld [vmem:[%s561_s1 + $0x70] sm:$0xff]  ;;  %v43_v40 = vld [vmem:[%s561_s1 + $0x78] sm:$0xff]  ;;  %v405_v41 = vpack.c.bf16 %v141_v37, %v140_v36  ;;  %v142_v42 = vld [vmem:[%s563_s3 + $0x60] sm:$0xff] }
   0xb   :  { %v143_v43 = vld [vmem:[%s563_s3 + $0x68] sm:$0xff]  ;;  %v381_v44 = vpack.c.bf16 %v43_v40, %v42_v39  ;;  %v144_v47 = vld [vmem:[%s563_s3 + $0x70] sm:$0xff]  ;;  %v145_v48 = vld [vmem:[%s563_s3 + $0x78] sm:$0xff] }
   0xc   :  { %392 = vmatpush3.bf16.msra.mxu1 %v389_v17  ;;  %v409_v45 = vpack.c.bf16 %v143_v43, %v142_v42  ;;  %v27_v46 = vld [vmem:[%s562_s0 + $0x8] sm:$0xff]  ;;  %v413_v49 = vpack.c.bf16 %v145_v48, %v144_v47  ;;  %v245_v50 = vld [vmem:[%s564_s2] ss:$0 sm:$0xff] }
   0xd   :  { %364 = vmatpush3.bf16.msra.mxu0 %v361_v8  ;;  %394 = vmatprep.subr.bf16.mxu1 %v393_v23  ;;  %v246_v57 = vld [vmem:[%s565_s4] ss:$0 sm:$0xff] }
   0xe   :  { %366 = vmatprep.subr.bf16.mxu0 %v365_v20 }
  0x10   :  { %396 = vmatpush3.bf16.msra.mxu1 %v393_v23 }
  0x11   :  { %368 = vmatpush3.bf16.msra.mxu0 %v365_v20  ;;  %398 = vmatprep.subr.bf16.mxu1 %v397_v29 }
  0x12   :  { %370 = vmatprep.subr.bf16.mxu0 %v369_v26 }
  0x14   :  { %400 = vmatpush3.bf16.msra.mxu1 %v397_v29 }
  0x15   :  { %372 = vmatpush3.bf16.msra.mxu0 %v369_v26  ;;  %402 = vmatprep.subr.bf16.mxu1 %v401_v35 }
  0x16   :  { %374 = vmatprep.subr.bf16.mxu0 %v373_v32 }
  0x18   :  { %404 = vmatpush3.bf16.msra.mxu1 %v401_v35 }
  0x19   :  { %376 = vmatpush3.bf16.msra.mxu0 %v373_v32  ;;  %406 = vmatprep.subr.bf16.mxu1 %v405_v41 }
  0x1a   :  { %378 = vmatprep.subr.bf16.mxu0 %v377_v38 }
  0x1c   :  { %408 = vmatpush3.bf16.msra.mxu1 %v405_v41 }
  0x1d   :  { %380 = vmatpush3.bf16.msra.mxu0 %v377_v38  ;;  %410 = vmatprep.subr.bf16.mxu1 %v409_v45 }
  0x1e   :  { %382 = vmatprep.subr.bf16.mxu0 %v381_v44 }
  0x20   :  { %412 = vmatpush3.bf16.msra.mxu1 %v409_v45 }
  0x21   :  { %384 = vmatpush3.bf16.msra.mxu0 %v381_v44  ;;  %414 = vmatprep.subr.bf16.mxu1 %v413_v49 }
  0x24   :  { %316 = vmatmul.mubr.f32.vlgmr.msra.gmra.mrb[0].mxu0 %v27_v46  ;;  %416 = vmatpush3.bf16.msra.mxu1 %v413_v49 }
  0xf7   :  { %v317_v51 = vpop.f32.mrb[0].mxu0 }
  0xf8   :  { %v123_v52 = vadd.f32 %v317_v51, %v245_v50  ;;  %v117_v53 = vpop.f32.mrb[1].mxu0 }
  0xf9   :  { %v118_v54 = vadd.f32 %v245_v50, %v117_v53 }
  0xfa   :  { %v127_v56 = vmax.f32 %v123_v52, 0.0 }
  0xfb   :  { %v126_v55 = vmax.f32 %v118_v54, 0.0 }
  0xfd   :  { %350 = vmatprep.mubr.f32.mxu1 %v126_v55 }
  0xfe   :  { %351 = vmatmul.mubr.f32.vlgmr.msra.gmra.mrb[0].mxu1 %v127_v56 }
 0x1d1   :  { %v352_v58 = vpop.f32.mrb[0].mxu1 }
 0x1d2   :  { %v238_v59 = vadd.f32 %v352_v58, %v246_v57  ;;  %v212_v60 = vpop.f32.mrb[1].mxu1 }
 0x1d3   :  { %v237_v61 = vadd.f32 %v246_v57, %v212_v60 }
 0x1d4   :  { %240 = vst [vmem:[%s566_s5 + $0x8] sm:$0xff] %v238_v59 }
 0x1d5   :  { %239 = vst [vmem:[%s566_s5] sm:$0xff] %v237_v61 }

</bundles_post_ra>
